<compile_context>
chip_gen: v5e
topology: v5e:2x2
jax: 0.10.0
libtpu: 0.0.40
codegen_flags: <defaults>
</compile_context>

<pallas_src>
import functools
import math

import jax
import jax.numpy as jnp
from jax.experimental import pallas as pl
from jax.experimental.pallas import tpu as pltpu

# Ackley constants (set in Ackley.__init__).
A_CONST = 20.0
B_CONST = 0.2
C_CONST = 2.0 * math.pi
E_CONST = math.e


def _round_up(x, mult):
    return ((x + mult - 1) // mult) * mult


def _ackley_kernel(shift_ref, x_ref, o_ref, *, inv_m):
    # shift_ref: (1,) SMEM scalar; x_ref: (tile_n, m) VMEM (native dtype);
    # o_ref: (tile_n, 1) f32 VMEM.
    z = x_ref[...].astype(jnp.float32) - shift_ref[0]
    mean_sq = jnp.sum(z * z, axis=-1, keepdims=True) * inv_m               # (tile_n, 1)
    mean_cos = jnp.sum(jnp.cos(C_CONST * z), axis=-1, keepdims=True) * inv_m
    term1 = -A_CONST * jnp.exp(-B_CONST * jnp.sqrt(mean_sq))
    term2 = -jnp.exp(mean_cos)
    o_ref[...] = term1 + term2 + (A_CONST + E_CONST)


def _choose_tile_n(n, m):
    """Pick the row-tile size.

    Targets:
      * input DMA per tile >= ~1 MiB (amortize ~0.35us per-grid-step overhead),
      * per-buffer f32 footprint <= 8 MiB so double-buffered inputs (16 MiB)
        fit under the 32 MiB scoped-VMEM limit we request (v7x-safe),
      * >= ~4 grid steps for moderate N so v7x's 2 TensorCores both get work,
      * tile_n a multiple of 8 (sublane tiling constraint).
    """
    m = max(m, 1)
    # VMEM budget: 2 Mi f32 elements per input buffer (= 8 MiB f32).
    budget_elems = 2 << 20
    cap = max(8, ((budget_elems // m) // 8) * 8)
    # ~1 MiB f32 per tile, but at least 2048 rows when the budget allows.
    target_rows = max(2048, _round_up((1 << 18) // m, 8))
    tile_n = min(cap, target_rows)
    # Keep >= ~4 grid steps for moderate N (v7x megacore utilization).
    if n > 32:
        tile_n = min(tile_n, max(8, _round_up(pl.cdiv(n, 4), 8)))
    # Never use a block (much) larger than the array itself.
    tile_n = min(tile_n, _round_up(n, 8))
    return tile_n


def ackley_forward(x, shift=0.0):
    """Ackley forward over rows of x: returns shape (N,) float32."""
    n, m = x.shape
    tile_n = _choose_tile_n(n, m)
    grid = (pl.cdiv(n, tile_n),)

    shift_arr = jnp.asarray([shift], dtype=jnp.float32)
    kernel = functools.partial(_ackley_kernel, inv_m=1.0 / m)

    out = pl.pallas_call(
        kernel,
        out_shape=jax.ShapeDtypeStruct((n, 1), jnp.float32),
        grid_spec=pltpu.PrefetchScalarGridSpec(
            num_scalar_prefetch=1,
            grid=grid,
            in_specs=[pl.BlockSpec((tile_n, m), lambda i, shift_ref: (i, 0))],
            out_specs=pl.BlockSpec((tile_n, 1), lambda i, shift_ref: (i, 0)),
        ),
        compiler_params=pltpu.CompilerParams(
            dimension_semantics=("parallel",),
            vmem_limit_bytes=32 * 1024 * 1024,
        ),
    )(shift_arr, x)
    return out[:n, 0]


def init_ackley_params(key, N, m, upper, lower, init_noise, dtype=jnp.float32):
    """Deterministic re-implementation of PEDS_Model.__init__ (rv=False path)."""
    k1, k2 = jax.random.split(key)
    center = lower + jax.random.uniform(k1, (m,)) * (upper - lower)
    x = center + jax.random.normal(k2, (N, m)) * init_noise
    return x.astype(dtype)


def ackley_reference(x, shift=0.0):
    z = x.astype(jnp.float32) - shift
    term1 = -A_CONST * jnp.exp(-B_CONST * jnp.sqrt(jnp.mean(z * z, axis=1)))
    term2 = -jnp.exp(jnp.mean(jnp.cos(C_CONST * z), axis=1))
    return term1 + term2 + A_CONST + E_CONST


if __name__ == "__main__":
    # Small shapes consistent with the module: N particles, m-dimensional Ackley.
    N, m = 8, 128
    upper, lower, init_noise, shift = 5.0, -5.0, 0.5, 0.0

    key = jax.random.PRNGKey(0)
    x = init_ackley_params(key, N, m, upper, lower, init_noise)

    out = jax.block_until_ready(ackley_forward(x, shift=shift))
    ref = ackley_reference(x, shift=shift)
    assert out.shape == (N,), out.shape
    assert jnp.allclose(out, ref, rtol=1e-5, atol=1e-4), (out, ref)

    # Tiled / ragged multi-block path with a non-aligned N (no wrapper-side pad).
    N2 = 1100
    x2 = init_ackley_params(jax.random.PRNGKey(1), N2, m, upper, lower, init_noise)
    out2 = jax.block_until_ready(ackley_forward(x2, shift=0.25))
    ref2 = ackley_reference(x2, shift=0.25)
    assert out2.shape == (N2,), out2.shape
    assert jnp.allclose(out2, ref2, rtol=1e-5, atol=1e-4), (out2, ref2)

    # Native-dtype path: bf16 input is streamed as-is and upcast inside the kernel.
    x3 = init_ackley_params(jax.random.PRNGKey(2), 64, m, upper, lower, init_noise,
                            dtype=jnp.bfloat16)
    out3 = jax.block_until_ready(ackley_forward(x3, shift=0.0))
    ref3 = ackley_reference(x3, shift=0.0)
    assert out3.shape == (64,), out3.shape
    assert jnp.allclose(out3, ref3, rtol=1e-5, atol=1e-4), (out3, ref3)

    # TODO(synk): the PyTorch forward also prints a host-side warning when the
    # output contains NaN; that host-side side effect is not replicated.
    print("KERNEL_OK")
</pallas_src>

<mosaic_0001>
module attributes {stable_mosaic.version = 11 : i64} {
  func.func @_ackley_kernel(%arg0: i32, %arg1: memref<1xf32, #tpu.memory_space<smem>>, %arg2: memref<8x128xf32, #tpu.memory_space<vmem>>, %arg3: memref<8x1xf32, #tpu.memory_space<vmem>>) attributes {dimension_semantics = [#tpu.dimension_semantics<parallel>], iteration_bounds = array<i64: 1>, scalar_prefetch = 1 : i64, scratch_operands = 0 : i64, tpu.core_type = #tpu.core_type<tc>, window_params = [{transform_indices = @transform_0, window_bounds = array<i64: 8, 128>}, {transform_indices = @transform_1, window_bounds = array<i64: 8, 1>}]} {
    %c0 = arith.constant 0 : index
    %c0_0 = arith.constant 0 : index
    %0 = vector.load %arg2[%c0, %c0_0] : memref<8x128xf32, #tpu.memory_space<vmem>>, vector<8x128xf32>
    %c0_1 = arith.constant 0 : index
    %1 = memref.load %arg1[%c0_1] : memref<1xf32, #tpu.memory_space<smem>>
    %2 = vector.broadcast %1 : f32 to vector<8x128xf32>
    %3 = arith.subf %0, %2 : vector<8x128xf32>
    %4 = arith.mulf %3, %3 : vector<8x128xf32>
    %cst = arith.constant dense<0.000000e+00> : vector<8xf32>
    %5 = vector.multi_reduction <add>, %4, %cst [1] : vector<8x128xf32> to vector<8xf32>
    %6 = vector.shape_cast %5 : vector<8xf32> to vector<8x1xf32>
    %cst_2 = arith.constant 7.812500e-03 : f32
    %7 = vector.broadcast %cst_2 : f32 to vector<8x1xf32>
    %8 = arith.mulf %6, %7 : vector<8x1xf32>
    %cst_3 = arith.constant 6.28318548 : f32
    %9 = vector.broadcast %cst_3 : f32 to vector<8x128xf32>
    %10 = arith.mulf %9, %3 : vector<8x128xf32>
    %11 = math.cos %10 : vector<8x128xf32>
    %cst_4 = arith.constant dense<0.000000e+00> : vector<8xf32>
    %12 = vector.multi_reduction <add>, %11, %cst_4 [1] : vector<8x128xf32> to vector<8xf32>
    %13 = vector.shape_cast %12 : vector<8xf32> to vector<8x1xf32>
    %cst_5 = arith.constant 7.812500e-03 : f32
    %14 = vector.broadcast %cst_5 : f32 to vector<8x1xf32>
    %15 = arith.mulf %13, %14 : vector<8x1xf32>
    %16 = math.sqrt %8 : vector<8x1xf32>
    %cst_6 = arith.constant -2.000000e-01 : f32
    %17 = vector.broadcast %cst_6 : f32 to vector<8x1xf32>
    %18 = arith.mulf %17, %16 : vector<8x1xf32>
    %19 = math.exp %18 : vector<8x1xf32>
    %cst_7 = arith.constant -2.000000e+01 : f32
    %20 = vector.broadcast %cst_7 : f32 to vector<8x1xf32>
    %21 = arith.mulf %20, %19 : vector<8x1xf32>
    %22 = math.exp %15 : vector<8x1xf32>
    %cst_8 = arith.constant 0.000000e+00 : f32
    %23 = vector.broadcast %cst_8 : f32 to vector<8x1xf32>
    %24 = arith.subf %23, %22 : vector<8x1xf32>
    %25 = arith.addf %21, %24 : vector<8x1xf32>
    %cst_9 = arith.constant 22.7182827 : f32
    %26 = vector.broadcast %cst_9 : f32 to vector<8x1xf32>
    %27 = arith.addf %25, %26 : vector<8x1xf32>
    %c0_10 = arith.constant 0 : index
    %c0_11 = arith.constant 0 : index
    %28 = vector.load %arg3[%c0_10, %c0_11] : memref<8x1xf32, #tpu.memory_space<vmem>>, vector<8x1xf32>
    tpu.vector_store %arg3[%c0_10, %c0_11], %27 {strides = array<i32>} : memref<8x1xf32, #tpu.memory_space<vmem>>, vector<8x1xf32>,
    return
  }
  func.func @transform_0(%arg0: i32, %arg1: memref<1xf32, #tpu.memory_space<smem>>) -> (i32, i32) {
    %c0_i32 = arith.constant 0 : i32
    %c0_i32_0 = arith.constant 0 : i32
    return %arg0, %c0_i32 : i32, i32
  }
  func.func @transform_1(%arg0: i32, %arg1: memref<1xf32, #tpu.memory_space<smem>>) -> (i32, i32) {
    %c0_i32 = arith.constant 0 : i32
    %c0_i32_0 = arith.constant 0 : i32
    return %arg0, %c0_i32 : i32, i32
  }
}

</mosaic_0001>

<bundles_post_ra>
// kernel: tpu_custom_call.1
= control target key start
LH: loop header
LB: loop body
LE: loop exit
PB: predicated region body
PF: predicated region fallthrough
CT: control target
= control target key end

     0   :  { %8 = vsyncpa [#allocation5], 0  ;;  %s261_s12 = smov [#allocation4]   ;;  %s347_s0 = inlined_call_operand.<no memory space> [shape: f32[1], index: 0, kind: input, shape index: {}]   ;;  %s348_s1 = inlined_call_operand.hbm [shape: f32[8,128], index: 1, kind: input, shape index: {}]   ;;  %s349_s2 = inlined_call_operand.vmem [shape: f32[8,1], index: 2, kind: output, shape index: {}]  }
   0x1   :  { %s14_s11 = sshll.u32 %s348_s1, 4  ;;  %s16_s13 = sshll.u32 %s261_s12, 4  ;;  %s15_s11 = int_to_ptr.hbm [resolvable:$true] %s14_s11  ;;  %s17_s13 = int_to_ptr.vmem [resolvable:$true] %s16_s13 }
   0x2   :  { %19 = dma.hbm_to_vmem [thread:$0]  %s15_s11, 128, %s17_s13, [#allocation5]  }
   0x3   :  { %259 = dma.done.wait [#allocation5], 128  }
   0x4   :  { %260 = vsyncadd [#allocation5], 4294967168  ;;  %v26_v0 = vstv %s347_s0  ;;  %v24_v1 = vld [vmem:[#allocation4] sm:$0xff]  ;;  %v262_v16 = vmov 683565275  }
   0x5   :  { %v27_v2 = vsub.f32 %v24_v1, %v26_v0  ;;  %v263_v18 = vmov 2475754826   ;;  %v264_v20 = vmov 2131351028   ;;  %v265_v22 = vmov 2102212464  }
   0x6   :  { %v266_v24 = vmov 920167782   ;;  %v267_v30 = vmov 1326507024  }
   0x7   :  { %v28_v3 = vmul.f32 %v27_v2, %v27_v2  ;;  %v290_v4 = vmul.f32 6.2831855, %v27_v2 }
   0x9   :  { %v36_v5 = vand.u32 2139095040, %v290_v4  ;;  %29 = vadd.xlane.f32.xlu0 %v28_v3  ;;  %v33_v7 = vand.u32 2147483647, %v290_v4  ;;  %vm35_vm12 = vcmp.lt.s32.totalorder %v290_v4, 0 }
   0xb   :  { %v37_v6 = vshrl.u32 %v36_v5, 23  ;;  %v40_v10 = vand.u32 8388607, %v33_v7  ;;  %v268_v5 = vmov 0   ;;  %vm334_vm13 = vcmp.le.f32.partialorder %v33_v7, 0.7853982 }
   0xd   :  { %v218_v8 = vadd.s32 4294967169, %v37_v6  ;;  %v41_v14 = vor.u32 8388608, %v40_v10 }
   0xf   :  { %v43_v9 = vadd.s32 1, %v218_v8  ;;  %v299_v32 = vshll.u32 %v41_v14, 8 }
  0x11   :  { %vm44_vm0 = vcmp.gt.s32.totalorder %v43_v9, 0  ;;  %v82_v44 = vand.u32 65535, %v299_v32  ;;  %v83_v45 = vshrl.u32 %v299_v32, 16 }
  0x12   :  { %v45_v11 = vsel %vm44_vm0, %v43_v9, 0 }
  0x13   :  { %v47_v12 = vand.u32 31, %v45_v11  ;;  %v296_v13 = vshrl.u32 %v45_v11, 5 }
  0x15   :  { %v48_v15 = vsub.s32 32, %v47_v12  ;;  %v50_v17 = vshll.u32 %v262_v16, %v47_v12  ;;  %v53_v19 = vshll.u32 %v263_v18, %v47_v12  ;;  %v56_v21 = vshll.u32 %v264_v20, %v47_v12 }
  0x16   :  { %v59_v23 = vshll.u32 %v265_v22, %v47_v12  ;;  %v62_v25 = vshll.u32 %v266_v24, %v47_v12  ;;  %vm65_vm1 = vcmp.lt.s32.totalorder %v296_v13, 1  ;;  %vm68_vm2 = vcmp.lt.s32.totalorder %v296_v13, 4 }
  0x17   :  { %v51_v26 = vshrl.u32 %v263_v18, %v48_v15  ;;  %v54_v27 = vshrl.u32 %v264_v20, %v48_v15  ;;  %v57_v28 = vshrl.u32 %v265_v22, %v48_v15  ;;  %v60_v29 = vshrl.u32 %v266_v24, %v48_v15 }
  0x18   :  { %v63_v31 = vshrl.u32 %v267_v30, %v48_v15  ;;  %vm67_vm3 = vcmp.lt.s32.totalorder %v296_v13, 3  ;;  %vm66_vm4 = vcmp.lt.s32.totalorder %v296_v13, 2  ;;  %v49_v52 = vshrl.u32 %v262_v16, %v48_v15 }
  0x19   :  { %v52_v33 = vor.u32 %v51_v26, %v50_v17  ;;  %v55_v34 = vor.u32 %v54_v27, %v53_v19  ;;  %v58_v35 = vor.u32 %v57_v28, %v56_v21  ;;  %v61_v36 = vor.u32 %v60_v29, %v59_v23 }
  0x1a   :  { %v64_v37 = vor.u32 %v63_v31, %v62_v25 }
  0x1b   :  { %v73_v38 = vsel %vm65_vm1, %v52_v33, %v55_v34  ;;  %v77_v39 = vsel %vm65_vm1, %v55_v34, %v58_v35  ;;  %v74_v40 = vsel %vm68_vm2, %v61_v36, 920167782  ;;  %v69_v1 = vsel %vm65_vm1, %v49_v52, %v52_v33 }
  0x1c   :  { %v78_v41 = vsel %vm68_vm2, %v64_v37, 1326507024  ;;  %v75_v42 = vsel %vm67_vm3, %v58_v35, %v74_v40  ;;  %v70_v3 = vsel %vm68_vm2, %v58_v35, 2102212464  ;;  %vm176_vm1 = vweird.f32 %v290_v4 }
  0x1d   :  { %v79_v43 = vsel %vm67_vm3, %v61_v36, %v78_v41  ;;  %v76_v46 = vsel %vm66_vm4, %v73_v38, %v75_v42  ;;  %v71_v16 = vsel %vm67_vm3, %v55_v34, %v70_v3 }
  0x1e   :  { %v80_v47 = vsel %vm66_vm4, %v77_v39, %v79_v43  ;;  %v106_v50 = vand.u32 65535, %v76_v46  ;;  %v107_v51 = vshrl.u32 %v76_v46, 16  ;;  %v72_v24 = vsel %vm66_vm4, %v69_v1, %v71_v16 }
  0x1f   :  { %v84_v48 = vand.u32 65535, %v80_v47  ;;  %v85_v49 = vshrl.u32 %v80_v47, 16  ;;  %v126_v28 = vmul.u32 %v299_v32, %v72_v24  ;;  %vm211_vm4 = vcmask 7168  }
  0x20   :  { %v108_v56 = vmul.u32 %v106_v50, %v82_v44  ;;  %v109_v57 = vmul.u32 %v107_v51, %v82_v44  ;;  %v110_v58 = vmul.u32 %v106_v50, %v83_v45  ;;  %v111_v62 = vmul.u32 %v107_v51, %v83_v45 }
  0x21   :  { %v86_v53 = vmul.u32 %v84_v48, %v82_v44  ;;  %v87_v54 = vmul.u32 %v85_v49, %v82_v44  ;;  %v88_v55 = vmul.u32 %v84_v48, %v83_v45  ;;  %v89_v59 = vmul.u32 %v85_v49, %v83_v45 }
  0x22   :  { %v112_v63 = vshll.u32 %v109_v57, 16  ;;  %v114_v0 = vshll.u32 %v110_v58, 16  ;;  %v113_v14 = vshrl.u32 %v109_v57, 16  ;;  %v115_v20 = vshrl.u32 %v110_v58, 16 }
  0x23   :  { %v90_v60 = vshll.u32 %v87_v54, 16  ;;  %v92_v61 = vshll.u32 %v88_v55, 16  ;;  %v91_v9 = vshrl.u32 %v87_v54, 16  ;;  %v93_v17 = vshrl.u32 %v88_v55, 16 }
  0x24   :  { %vm116_vm6 = vc.u32 %v108_v56, %v112_v63  ;;  %v118_v8 = vadd.s32 %v112_v63, %v108_v56 }
  0x25   :  { %vm94_vm5 = vc.u32 %v86_v53, %v90_v60  ;;  %v96_v2 = vadd.s32 %v90_v60, %v86_v53  ;;  %v117_v11 = vsel %vm116_vm6, 1, %v268_v5 }
  0x26   :  { %v95_v6 = vsel %vm94_vm5, 1, %v268_v5  ;;  %v119_v15 = vadd.s32 %v117_v11, %v111_v62  ;;  %vm120_vm8 = vc.u32 %v118_v8, %v114_v0  ;;  %v122_v23 = vadd.s32 %v118_v8, %v114_v0 }
  0x27   :  { %v97_v10 = vadd.s32 %v95_v6, %v89_v59  ;;  %vm98_vm7 = vc.u32 %v96_v2, %v92_v61  ;;  %v121_v19 = vsel %vm120_vm8, 1, %v268_v5 }
  0x28   :  { %v99_v12 = vsel %vm98_vm7, 1, %v268_v5  ;;  %v123_v21 = vadd.s32 %v121_v19, %v119_v15 }
  0x29   :  { %v101_v18 = vadd.s32 %v99_v12, %v97_v10 }
  0x2a   :  { %v124_v25 = vadd.s32 %v123_v21, %v113_v14 }
  0x2b   :  { %v102_v22 = vadd.s32 %v101_v18, %v91_v9 }
  0x2c   :  { %v125_v27 = vadd.s32 %v124_v25, %v115_v20 }
  0x2d   :  { %v103_v26 = vadd.s32 %v102_v22, %v93_v17 }
  0x2e   :  { %v129_v29 = vadd.s32 1, %v125_v27 }
  0x2f   :  { %vm128_vm9 = vc.u32 %v103_v26, %v122_v23  ;;  %v127_v13 = vadd.s32 %v122_v23, %v103_v26 }
  0x30   :  { %v130_v30 = vsel %vm128_vm9, %v129_v29, %v125_v27 }
  0x31   :  { %v131_v31 = vadd.s32 %v130_v30, %v126_v28 }
  0x33   :  { %v132_v33 = vadd.s32 536870912, %v131_v31 }
  0x35   :  { %v133_v34 = vshrl.u32 %v132_v33, 30 }
  0x37   :  { %v134_v35 = vshll.u32 %v133_v34, 30  ;;  %v157_v55 = vsub.s32 4, %v133_v34 }
  0x39   :  { %v135_v36 = vsub.s32 %v131_v31, %v134_v35  ;;  %v158_v60 = vsel %vm35_vm12, %v157_v55, %v133_v34 }
  0x3a   :  { %v160_v63 = vsel %vm334_vm13, 0, %v158_v60 }
  0x3b   :  { %vm136_vm10 = vcmp.lt.s32.totalorder %v135_v36, 0  ;;  %v137_v37 = vsub.s32 0, %v135_v36  ;;  %v177_v3 = vand.u32 3, %v160_v63 }
  0x3d   :  { %v138_v38 = vsel %vm136_vm10, %v137_v37, %v135_v36  ;;  %vm182_vm14 = vcmp.eq.s32.totalorder %v177_v3, 2  ;;  %vm179_vm15 = vcmp.eq.s32.totalorder %v177_v3, 0  ;;  %vm178_vm0 = vcmp.lt.s32.totalorder %v177_v3, 2 }
  0x3e   :  { %v139_v39 = vclz %v138_v38 }
  0x40   :  { %v219_v40 = vadd.s32 4294967294, %v139_v39 }
  0x42   :  { %vm220_vm11 = vcmp.lt.s32.totalorder %v219_v40, 0 }
  0x43   :  { %v142_v41 = vsel %vm220_vm11, 0, %v219_v40 }
  0x44   :  { %v143_v42 = vsub.s32 32, %v142_v41  ;;  %v144_v43 = vshll.u32 %v135_v36, %v142_v41  ;;  %v147_v44 = vsub.s32 4294967266, %v142_v41 }
  0x46   :  { %v145_v32 = vshrl.u32 %v127_v13, %v143_v42  ;;  %v148_v45 = vadd.s32 127, %v147_v44 }
  0x48   :  { %v146_v46 = vor.u32 %v145_v32, %v144_v43  ;;  %v149_v47 = vshll.u32 %v148_v45, 23 }
  0x4a   :  { %v150_v48 = vor.u32 4788187, %v149_v47  ;;  %v153_v49 = vcvt.s32.f32 %v146_v46 }
  0x4c   :  { %v151_v50 = vand.u32 2147483647, %v150_v48 }
  0x4e   :  { %v154_v51 = vmul.f32 %v153_v49, %v151_v50 }
  0x50   :  { %v155_v53 = vxor.u32 2147483648, %v154_v51 }
  0x52   :  { %v156_v54 = vsel %vm35_vm12, %v155_v53, %v154_v51 }
  0x53   :  { %v159_v56 = vsel %vm334_vm13, %v290_v4, %v156_v54 }
  0x54   :  { %v161_v57 = vmul.f32 %v159_v56, %v159_v56 }
  0x56   :  { %v162_v58 = vmul.f32 -0.001358992, %v161_v57  ;;  %v169_v59 = vmul.f32 -0.00019511016, %v161_v57 }
  0x58   :  { %v163_v61 = vadd.f32 0.041655596, %v162_v58  ;;  %v170_v62 = vadd.f32 0.008332121, %v169_v59 }
  0x5a   :  { %v164_v7 = vmul.f32 %v163_v61, %v161_v57  ;;  %v171_v0 = vmul.f32 %v170_v62, %v161_v57 }
  0x5c   :  { %v165_v1 = vadd.f32 -0.4999988, %v164_v7  ;;  %v172_v2 = vadd.f32 -0.16666654, %v171_v0 }
  0x5e   :  { %v166_v5 = vmul.f32 %v165_v1, %v161_v57  ;;  %v173_v6 = vmul.f32 %v172_v2, %v161_v57 }
  0x60   :  { %v167_v8 = vadd.f32 1.0, %v166_v5  ;;  %v174_v9 = vadd.f32 1.0, %v173_v6 }
  0x62   :  { %v175_v10 = vmul.f32 %v174_v9, %v159_v56  ;;  %v183_v11 = vxor.u32 2147483648, %v167_v8 }
  0x64   :  { %v180_v12 = vxor.u32 2147483648, %v175_v10  ;;  %v184_v14 = vsel %vm182_vm14, %v183_v11, %v175_v10 }
  0x66   :  { %v181_v15 = vsel %vm179_vm15, %v167_v8, %v180_v12 }
  0x67   :  { %v185_v16 = vsel %vm178_vm0, %v181_v15, %v184_v14 }
  0x68   :  { %v186_v17 = vsel %vm176_vm1, nan, %v185_v16 }
  0x69   :  { %187 = vadd.xlane.f32.xlu0 %v186_v17 }
  0x7c   :  { %v30_v18 = vpop.xlane.xlu0 %29 }
  0x7d   :  { %v31_v19 = vmul.f32 0.0078125, %v30_v18 }
  0x7f   :  { %229 = vrsqrt.f32 %v31_v19  ;;  %vm197_vm2 = vcmp.eq.f32.partialorder %v31_v19, inf  ;;  %v200_v27 = vand.u32 2147483648, %v31_v19  ;;  %vm199_vm3 = vcmp.eq.f32.partialorder %v31_v19, 0.0 }
  0x85   :  { %v230_v20 = vpop.eup %229 }
  0x86   :  { %v191_v21 = vmul.f32 %v230_v20, %v31_v19 }
  0x88   :  { %v192_v22 = vmul.f32 %v230_v20, %v191_v21 }
  0x8a   :  { %v193_v23 = vmul.f32 0.5, %v192_v22 }
  0x8c   :  { %v194_v24 = vsub.f32 1.5, %v193_v23 }
  0x8e   :  { %v195_v25 = vmul.f32 %v230_v20, %v194_v24 }
  0x90   :  { %v196_v26 = vmul.f32 %v195_v25, %v31_v19 }
  0x92   :  { %v198_v28 = vsel %vm197_vm2, %v31_v19, %v196_v26 }
  0x93   :  { %v201_v29 = vsel %vm199_vm3, %v200_v27, %v198_v28 }
  0x94   :  { %v202_v4 = vmul.f32 -0.2, %v201_v29 }
  0x96   :  { %v203_v30 = vmul.f32 1.442695, %v202_v4 }
  0x98   :  { %231 = vpow2.f32 %v203_v30 }
  0x9e   :  { %v232_v35 = vpop.eup %231 }
  0x9f   :  { %v205_v37 = vmul.f32 -20.0, %v232_v35 }
  0xdc   :  { %v188_v31 = vpop.xlane.xlu0 %187 }
  0xdd   :  { %v189_v33 = vmul.f32 0.0078125, %v188_v31 }
  0xdf   :  { %v206_v34 = vmul.f32 1.442695, %v189_v33 }
  0xe1   :  { %233 = vpow2.f32 %v206_v34 }
  0xe7   :  { %v234_v36 = vpop.eup %233 }
  0xe8   :  { %v208_v38 = vsub.f32 0.0, %v234_v36 }
  0xea   :  { %v209_v39 = vadd.f32 %v208_v38, %v205_v37 }
  0xec   :  { %v210_v40 = vadd.f32 22.718283, %v209_v39 }
  0xee   :  { %212 = vst.msk [vmem:[%s349_s2] sm:$0xff] %vm211_vm4, %v210_v40 }
  0xef   :  { %217 = vsyncpa [#allocation5], 1 }

</bundles_post_ra>
